<compile_context>
chip_gen: v6e
topology: v6e:2x2x1
jax: 0.10.0
libtpu: 0.0.40
codegen_flags: <defaults>
</compile_context>

<pallas_src>
import jax
import jax.numpy as jnp
from jax import lax
from jax.experimental import pallas as pl
from jax.experimental.pallas import tpu as pltpu


def _embed_kernel(x_ref, w_ref, b_ref, o_ref):
    """K-tiled fused (x @ W + b) followed by L2 row-normalization.

    Grid axis 0 iterates over tiles of the contraction (dim_in) axis. The
    output BlockSpec index is constant across that axis, so o_ref is resident
    in VMEM and serves as the f32 accumulator directly (no scratch buffer).
    """
    k = pl.program_id(0)

    @pl.when(k == 0)
    def _():
        o_ref[...] = jnp.zeros_like(o_ref)

    o_ref[...] += jnp.dot(x_ref[...], w_ref[...],
                          preferred_element_type=jnp.float32)

    @pl.when(k == pl.num_programs(0) - 1)
    def _():
        y = o_ref[...] + b_ref[...]
        # L2 normalize rows: rsqrt lowers to the EUP (free slot). The tiny eps
        # guards the 0/0 case (PyTorch's Normalize would produce NaN there).
        inv_norm = lax.rsqrt(jnp.sum(y * y, axis=1, keepdims=True) + 1e-12)
        o_ref[...] = y * inv_norm


def _choose_tk(d_in, f, max_tile_bytes):
    """Largest multiple-of-128 divisor of d_in whose (tk, f) f32 tile fits."""
    cap = max(128, max_tile_bytes // (f * 4))
    best = 128
    t = 128
    while t <= d_in:
        if d_in % t == 0 and t <= cap:
            best = t
        t += 128
    return best


def embed(x, w, b, *, max_tile_bytes=4 << 20):
    """Forward of Embed: x.view(B, -1) @ W + b, then L2 row-normalize.

    w: [dim_in, dim_out]  (transpose of nn.Linear.weight)
    b: [dim_out]
    """
    B = x.shape[0]
    x2 = x.reshape(B, -1).astype(jnp.float32)
    d_in, F = w.shape
    assert x2.shape[1] == d_in, (x2.shape, w.shape)
    w = w.astype(jnp.float32)

    # Pad the contraction dim to a multiple of 128 so block shapes satisfy the
    # (8, 128) tiling constraint; zero padding does not change the matmul.
    pad = (-d_in) % 128
    if pad:
        x2 = jnp.pad(x2, ((0, 0), (0, pad)))
        w = jnp.pad(w, ((0, pad), (0, 0)))
        d_in += pad

    # Biggest affordable K tile: the kernel is weight-DMA bound, so fewer,
    # larger grid steps amortize the ~0.35 us/step overhead. A 4 MiB (tk, F)
    # f32 tile double-buffers comfortably in every generation's VMEM
    # (including v7x's 64 MiB / 32 MiB default scoped budget).
    tk = _choose_tk(d_in, F, max_tile_bytes)

    return pl.pallas_call(
        _embed_kernel,
        out_shape=jax.ShapeDtypeStruct((B, F), jnp.float32),
        grid_spec=pltpu.PrefetchScalarGridSpec(
            num_scalar_prefetch=0,
            grid=(d_in // tk,),
            in_specs=[
                pl.BlockSpec((B, tk), lambda k: (0, k)),   # activation tile
                pl.BlockSpec((tk, F), lambda k: (k, 0)),   # weight tile
                pl.BlockSpec((1, F), lambda k: (0, 0)),    # bias (resident)
            ],
            out_specs=pl.BlockSpec((B, F), lambda k: (0, 0)),
        ),
        compiler_params=pltpu.CompilerParams(
            dimension_semantics=("arbitrary",)),  # contraction axis
    )(x2, w, b.reshape(1, F).astype(jnp.float32))


def embed_reference(x, w, b):
    y = x.reshape(x.shape[0], -1) @ w + b
    norm = jnp.sqrt(jnp.sum(y * y, axis=1, keepdims=True))
    return y / norm


if __name__ == "__main__":
    # Embed(dim_in=1024, dim_out=128): input (2, 4, 16, 16) flattens to 1024,
    # matching the module's x.view(x.shape[0], -1).
    B, C, H, W = 2, 4, 16, 16
    DIM_IN, DIM_OUT = C * H * W, 128

    key = jax.random.PRNGKey(0)
    kx, kw, kb = jax.random.split(key, 3)
    bound = 1.0 / jnp.sqrt(DIM_IN)
    x = jax.random.normal(kx, (B, C, H, W), jnp.float32)
    w = jax.random.uniform(kw, (DIM_IN, DIM_OUT), jnp.float32, -bound, bound)
    b = jax.random.uniform(kb, (DIM_OUT,), jnp.float32, -bound, bound)

    out = jax.block_until_ready(embed(x, w, b))
    ref = embed_reference(x, w, b)

    assert out.shape == (B, DIM_OUT)
    assert bool(jnp.all(jnp.isfinite(out)))
    assert jnp.allclose(out, ref, atol=1e-5, rtol=1e-5), float(
        jnp.max(jnp.abs(out - ref)))
    # rows are unit L2-norm
    assert jnp.allclose(jnp.sum(out * out, axis=1), 1.0, atol=1e-5)
    print("KERNEL_OK")
</pallas_src>

<mosaic_0001>
module attributes {stable_mosaic.version = 11 : i64} {
  func.func @_embed_kernel(%arg0: i32, %arg1: memref<2x1024xf32, #tpu.memory_space<vmem>>, %arg2: memref<1024x128xf32, #tpu.memory_space<vmem>>, %arg3: memref<1x128xf32, #tpu.memory_space<vmem>>, %arg4: memref<2x128xf32, #tpu.memory_space<vmem>>) attributes {dimension_semantics = [#tpu.dimension_semantics<arbitrary>], iteration_bounds = array<i64: 1>, scalar_prefetch = 0 : i64, scratch_operands = 0 : i64, tpu.core_type = #tpu.core_type<tc>, window_params = [{transform_indices = @transform_0, window_bounds = array<i64: 2, 1024>}, {transform_indices = @transform_1, window_bounds = array<i64: 1024, 128>}, {pipeline_mode = #tpu.pipeline_mode<synchronous>, transform_indices = @transform_2, window_bounds = array<i64: 1, 128>}, {pipeline_mode = #tpu.pipeline_mode<synchronous>, transform_indices = @transform_3, window_bounds = array<i64: 2, 128>}]} {
    %c0_i32 = arith.constant 0 : i32
    %0 = arith.cmpi eq, %arg0, %c0_i32 : i32
    %1 = arith.extui %0 : i1 to i32
    %c0_i32_0 = arith.constant 0 : i32
    %2 = arith.cmpi ne, %1, %c0_i32_0 : i32
    scf.if %2 {
      %cst_10 = arith.constant 0.000000e+00 : f32
      %12 = vector.broadcast %cst_10 : f32 to vector<2x128xf32>
      %c0_11 = arith.constant 0 : index
      %c0_12 = arith.constant 0 : index
      %13 = vector.load %arg4[%c0_11, %c0_12] : memref<2x128xf32, #tpu.memory_space<vmem>>, vector<2x128xf32>
      tpu.vector_store %arg4[%c0_11, %c0_12], %12 {strides = array<i32>} : memref<2x128xf32, #tpu.memory_space<vmem>>, vector<2x128xf32>,
    } else {
    }
    %c0 = arith.constant 0 : index
    %c0_1 = arith.constant 0 : index
    %3 = vector.load %arg4[%c0, %c0_1] : memref<2x128xf32, #tpu.memory_space<vmem>>, vector<2x128xf32>
    %c0_2 = arith.constant 0 : index
    %c0_3 = arith.constant 0 : index
    %4 = vector.load %arg1[%c0_2, %c0_3] : memref<2x1024xf32, #tpu.memory_space<vmem>>, vector<2x1024xf32>
    %c0_4 = arith.constant 0 : index
    %c0_5 = arith.constant 0 : index
    %5 = vector.load %arg2[%c0_4, %c0_5] : memref<1024x128xf32, #tpu.memory_space<vmem>>, vector<1024x128xf32>
    %cst = arith.constant dense<0.000000e+00> : vector<2x128xf32>
    %6 = tpu.matmul %4, %5, %cst {dimension_numbers = #tpu.dot_dimension_numbers<[1], [0], [0], [1], [0, 0, 1, 1], [], []>} : vector<2x1024xf32>, vector<1024x128xf32>, vector<2x128xf32> -> vector<2x128xf32>
    %7 = arith.addf %3, %6 : vector<2x128xf32>
    %c0_6 = arith.constant 0 : index
    %c0_7 = arith.constant 0 : index
    %8 = vector.load %arg4[%c0_6, %c0_7] : memref<2x128xf32, #tpu.memory_space<vmem>>, vector<2x128xf32>
    tpu.vector_store %arg4[%c0_6, %c0_7], %7 {strides = array<i32>} : memref<2x128xf32, #tpu.memory_space<vmem>>, vector<2x128xf32>,
    %c0_i32_8 = arith.constant 0 : i32
    %9 = arith.cmpi eq, %arg0, %c0_i32_8 : i32
    %10 = arith.extui %9 : i1 to i32
    %c0_i32_9 = arith.constant 0 : i32
    %11 = arith.cmpi ne, %10, %c0_i32_9 : i32
    scf.if %11 {
      %c0_10 = arith.constant 0 : index
      %c0_11 = arith.constant 0 : index
      %12 = vector.load %arg4[%c0_10, %c0_11] : memref<2x128xf32, #tpu.memory_space<vmem>>, vector<2x128xf32>
      %c0_12 = arith.constant 0 : index
      %c0_13 = arith.constant 0 : index
      %13 = vector.load %arg3[%c0_12, %c0_13] : memref<1x128xf32, #tpu.memory_space<vmem>>, vector<1x128xf32>
      %14 = vector.broadcast %13 : vector<1x128xf32> to vector<2x128xf32>
      %15 = arith.addf %12, %14 : vector<2x128xf32>
      %16 = arith.mulf %15, %15 : vector<2x128xf32>
      %cst_14 = arith.constant dense<0.000000e+00> : vector<2xf32>
      %17 = vector.multi_reduction <add>, %16, %cst_14 [1] : vector<2x128xf32> to vector<2xf32>
      %18 = vector.shape_cast %17 : vector<2xf32> to vector<2x1xf32>
      %cst_15 = arith.constant 9.99999996E-13 : f32
      %19 = vector.broadcast %cst_15 : f32 to vector<2x1xf32>
      %20 = arith.addf %18, %19 : vector<2x1xf32>
      %21 = math.rsqrt %20 : vector<2x1xf32>
      %22 = vector.broadcast %21 : vector<2x1xf32> to vector<2x128xf32>
      %23 = arith.mulf %15, %22 : vector<2x128xf32>
      %c0_16 = arith.constant 0 : index
      %c0_17 = arith.constant 0 : index
      %24 = vector.load %arg4[%c0_16, %c0_17] : memref<2x128xf32, #tpu.memory_space<vmem>>, vector<2x128xf32>
      tpu.vector_store %arg4[%c0_16, %c0_17], %23 {strides = array<i32>} : memref<2x128xf32, #tpu.memory_space<vmem>>, vector<2x128xf32>,
    } else {
    }
    return
  }
  func.func @transform_0(%arg0: i32) -> (i32, i32) {
    %c0_i32 = arith.constant 0 : i32
    %c0_i32_0 = arith.constant 0 : i32
    return %c0_i32, %arg0 : i32, i32
  }
  func.func @transform_1(%arg0: i32) -> (i32, i32) {
    %c0_i32 = arith.constant 0 : i32
    %c0_i32_0 = arith.constant 0 : i32
    return %arg0, %c0_i32 : i32, i32
  }
  func.func @transform_2(%arg0: i32) -> (i32, i32) {
    %c0_i32 = arith.constant 0 : i32
    %c0_i32_0 = arith.constant 0 : i32
    %c0_i32_1 = arith.constant 0 : i32
    return %c0_i32, %c0_i32_0 : i32, i32
  }
  func.func @transform_3(%arg0: i32) -> (i32, i32) {
    %c0_i32 = arith.constant 0 : i32
    %c0_i32_0 = arith.constant 0 : i32
    %c0_i32_1 = arith.constant 0 : i32
    return %c0_i32, %c0_i32_0 : i32, i32
  }
}

</mosaic_0001>

<bundles_post_ra>
// kernel: tpu_custom_call.1
= control target key start
LH: loop header
LB: loop body
LE: loop exit
PB: predicated region body
PF: predicated region fallthrough
CT: control target
= control target key end

     0   :  { %8 = vsyncpa [#allocation3], 0  ;;  %s803_s0 = inlined_call_operand.hbm [shape: f32[2,1024], index: 0, kind: input, shape index: {}]   ;;  %s804_s1 = inlined_call_operand.hbm [shape: f32[1024,128], index: 1, kind: input, shape index: {}]   ;;  %s805_s2 = inlined_call_operand.vmem [shape: f32[1,128], index: 2, kind: input, shape index: {}]   ;;  %s806_s3 = inlined_call_operand.hbm [shape: f32[2,128], index: 3, kind: output, shape index: {}]  }
   0x1   :  { %9 = vsyncpa [#allocation6], 0 }
   0x2   :  { %10 = vsyncpa [#allocation4], 0  ;;  %s758_s12 = smov [#allocation2]   ;;  %s759_s14 = smov [#allocation5]  }
   0x3   :  { %s17_s13 = sshll.u32 %s758_s12, 4  ;;  %s26_s15 = sshll.u32 %s759_s14, 4  ;;  %s18_s13 = int_to_ptr.vmem [resolvable:$true] %s17_s13  ;;  %s27_s15 = int_to_ptr.vmem [resolvable:$true] %s26_s15 }
   0x4   :  { %s700_s16 = scalar_lea.vmem %s18_s13, 256  ;;  %p705_p1 = scmp.lt.s32.totalorder %s18_s13, %s18_s13 }
   0x5   :  { %p701_p0 = scmp.ne.s32.totalorder %s18_s13, %s700_s16  ;;  %p706_p2 = scmp.lt.s32.totalorder %s700_s16, %s700_s16 }
   0x7   :  { %p707_p3 = por %p706_p2, %p705_p1 }
   0x9   :  { %p708_p4 = pnand %p707_p3, %p701_p0 }
   0xb   :  { %711 = shalt.err (!%p708_p4)
}
   0xc   :  { %20 = dma.hbm_to_vmem [thread:$0]  %s803_s0, 256, %s18_s13, [#allocation3]  }
   0xd   :  { %s720_s19 = scalar_lea.vmem %s27_s15, 16384  ;;  %p725_p6 = scmp.lt.s32.totalorder %s27_s15, %s27_s15 }
   0xe   :  { %p721_p5 = scmp.ne.s32.totalorder %s27_s15, %s720_s19  ;;  %p726_p7 = scmp.lt.s32.totalorder %s720_s19, %s720_s19 }
  0x10   :  { %p727_p8 = por %p726_p7, %p725_p6 }
  0x12   :  { %p728_p9 = pnand %p727_p8, %p721_p5 }
  0x14   :  { %731 = shalt.err (!%p728_p9)
}
  0x15   :  { %s760_s20 = smov 128   ;;  %s761_s21 = smov 8  }
  0x16   :  { %32 = dma.hbm_to_vmem [thread:$0]  %s804_s1, 16384, %s27_s15, [#allocation6], %s760_s20, %s760_s20, %s761_s21  }
  0x17   :  { %752 = dma.done.wait [#allocation3], 256  }
  0x18   :  { %753 = vsyncadd [#allocation3], 4294967040 }
  0x19   :  { %754 = dma.done.wait [#allocation6], 16384  }
  0x1a   :  { %755 = vsyncadd [#allocation6], 4294950912  ;;  %v80_v0 = vld [vmem:[#allocation5 + $0xf8] sm:$0xff]  ;;  %v79_v4 = vld [vmem:[#allocation5 + $0xf0] sm:$0xff]  ;;  %v762_v30 = vmov 1983009808   ;;  %v183_v32 = vlaneseq }
  0x1b   :  { %v112_v1 = vld [vmem:[#allocation5 + $0x1f8] sm:$0xff]  ;;  %541 = vmatprep.subr.mxu0 %v80_v0  ;;  %v111_v5 = vld [vmem:[#allocation5 + $0x1f0] sm:$0xff]  ;;  %v78_v8 = vld [vmem:[#allocation5 + $0xe8] sm:$0xff]  ;;  %v181_v31 = vunpack.c.l.s4 %v762_v30  ;;  %vm516_vm0 = vcmask 1041408   ;;  %s764_s24 = smov [#allocation7]  }
  0x1c   :  { %v64_v2 = vld [vmem:[#allocation5 + $0x78] sm:$0xff]  ;;  %576 = vmatprep.subr.mxu1 %v112_v1  ;;  %v63_v6 = vld [vmem:[#allocation5 + $0x70] sm:$0xff]  ;;  %v110_v9 = vld [vmem:[#allocation5 + $0x1e8] sm:$0xff]  ;;  %v184_v42 = vshrl.u32 %v183_v32, 7  ;;  %s530_s25 = sshll.u32 %s764_s24, 4  ;;  %s531_s25 = int_to_ptr.vmem [resolvable:$true] %s530_s25 }
  0x1d   :  { %v96_v3 = vld [vmem:[#allocation5 + $0x178] sm:$0xff]  ;;  %542 = vmatpush3.msra.mxu0 %v64_v2  ;;  %v95_v7 = vld [vmem:[#allocation5 + $0x170] sm:$0xff]  ;;  %v62_v10 = vld [vmem:[#allocation5 + $0x68] sm:$0xff]  ;;  %v182_v41 = vunpack.c.0.s8 %v181_v31  ;;  %s732_s26 = scalar_lea.vmem %s531_s25, 32  ;;  %p737_p11 = scmp.lt.s32.totalorder %s531_s25, %s531_s25 }
  0x1e   :  { %577 = vmatpush3.msra.mxu1 %v96_v3  ;;  %543 = vmatprep.subr.mxu0 %v79_v4  ;;  %v94_v11 = vld [vmem:[#allocation5 + $0x168] sm:$0xff]  ;;  %v77_v12 = vld [vmem:[#allocation5 + $0xe0] sm:$0xff]  ;;  %v76_v16 = vld [vmem:[#allocation5 + $0xd8] sm:$0xff]  ;;  %p733_p10 = scmp.ne.s32.totalorder %s531_s25, %s732_s26  ;;  %p738_p12 = scmp.lt.s32.totalorder %s732_s26, %s732_s26 }
  0x1f   :  { %578 = vmatprep.subr.mxu1 %v111_v5  ;;  %544 = vmatpush3.msra.mxu0 %v63_v6  ;;  %v109_v13 = vld [vmem:[#allocation5 + $0x1e0] sm:$0xff]  ;;  %v108_v17 = vld [vmem:[#allocation5 + $0x1d8] sm:$0xff]  ;;  %v75_v20 = vld [vmem:[#allocation5 + $0xd0] sm:$0xff]  ;;  %v791_v51 = vsub.s32 %v182_v41, %v184_v42 }
  0x20   :  { %579 = vmatpush3.msra.mxu1 %v95_v7  ;;  %545 = vmatprep.subr.mxu0 %v78_v8  ;;  %v61_v14 = vld [vmem:[#allocation5 + $0x60] sm:$0xff]  ;;  %v60_v18 = vld [vmem:[#allocation5 + $0x58] sm:$0xff]  ;;  %v107_v21 = vld [vmem:[#allocation5 + $0x1d0] sm:$0xff]  ;;  %p739_p13 = por %p738_p12, %p737_p11 }
  0x21   :  { %580 = vmatprep.subr.mxu1 %v110_v9  ;;  %v93_v15 = vld [vmem:[#allocation5 + $0x160] sm:$0xff]  ;;  %546 = vmatpush3.msra.mxu0 %v62_v10  ;;  %v92_v19 = vld [vmem:[#allocation5 + $0x158] sm:$0xff]  ;;  %v59_v22 = vld [vmem:[#allocation5 + $0x50] sm:$0xff] }
  0x22   :  { %581 = vmatpush3.msra.mxu1 %v94_v11  ;;  %547 = vmatprep.subr.mxu0 %v77_v12  ;;  %v91_v23 = vld [vmem:[#allocation5 + $0x150] sm:$0xff]  ;;  %v74_v24 = vld [vmem:[#allocation5 + $0xc8] sm:$0xff]  ;;  %v73_v28 = vld [vmem:[#allocation5 + $0xc0] sm:$0xff]  ;;  %p740_p0 = pnand %p739_p13, %p733_p10 }
  0x23   :  { %582 = vmatprep.subr.mxu1 %v109_v13  ;;  %548 = vmatpush3.msra.mxu0 %v61_v14  ;;  %v106_v25 = vld [vmem:[#allocation5 + $0x1c8] sm:$0xff]  ;;  %v105_v29 = vld [vmem:[#allocation5 + $0x1c0] sm:$0xff]  ;;  %v72_v35 = vld [vmem:[#allocation5 + $0xb8] sm:$0xff] }
  0x24   :  { %583 = vmatpush3.msra.mxu1 %v93_v15  ;;  %549 = vmatprep.subr.mxu0 %v76_v16  ;;  %v58_v26 = vld [vmem:[#allocation5 + $0x48] sm:$0xff]  ;;  %v57_v33 = vld [vmem:[#allocation5 + $0x40] sm:$0xff]  ;;  %v104_v36 = vld [vmem:[#allocation5 + $0x1b8] sm:$0xff] }
  0x25   :  { %584 = vmatprep.subr.mxu1 %v108_v17  ;;  %550 = vmatpush3.msra.mxu0 %v60_v18  ;;  %v90_v27 = vld [vmem:[#allocation5 + $0x148] sm:$0xff]  ;;  %v89_v34 = vld [vmem:[#allocation5 + $0x140] sm:$0xff]  ;;  %v56_v37 = vld [vmem:[#allocation5 + $0x38] sm:$0xff] }
  0x26   :  { %585 = vmatpush3.msra.mxu1 %v92_v19  ;;  %551 = vmatprep.subr.mxu0 %v75_v20  ;;  %v88_v38 = vld [vmem:[#allocation5 + $0x138] sm:$0xff]  ;;  %v71_v39 = vld [vmem:[#allocation5 + $0xb0] sm:$0xff]  ;;  %v70_v45 = vld [vmem:[#allocation5 + $0xa8] sm:$0xff] }
  0x27   :  { %586 = vmatprep.subr.mxu1 %v107_v21  ;;  %552 = vmatpush3.msra.mxu0 %v59_v22  ;;  %v103_v40 = vld [vmem:[#allocation5 + $0x1b0] sm:$0xff]  ;;  %v102_v46 = vld [vmem:[#allocation5 + $0x1a8] sm:$0xff]  ;;  %v69_v49 = vld [vmem:[#allocation5 + $0xa0] sm:$0xff] }
  0x28   :  { %587 = vmatpush3.msra.mxu1 %v91_v23  ;;  %553 = vmatprep.subr.mxu0 %v74_v24  ;;  %v55_v43 = vld [vmem:[#allocation5 + $0x30] sm:$0xff]  ;;  %v54_v47 = vld [vmem:[#allocation5 + $0x28] sm:$0xff]  ;;  %v101_v50 = vld [vmem:[#allocation5 + $0x1a0] sm:$0xff] }
  0x29   :  { %588 = vmatprep.subr.mxu1 %v106_v25  ;;  %554 = vmatpush3.msra.mxu0 %v58_v26  ;;  %v87_v44 = vld [vmem:[#allocation5 + $0x130] sm:$0xff]  ;;  %v86_v48 = vld [vmem:[#allocation5 + $0x128] sm:$0xff]  ;;  %v53_v52 = vld [vmem:[#allocation5 + $0x20] sm:$0xff] }
  0x2a   :  { %589 = vmatpush3.msra.mxu1 %v90_v27  ;;  %555 = vmatprep.subr.mxu0 %v73_v28  ;;  %v85_v53 = vld [vmem:[#allocation5 + $0x120] sm:$0xff]  ;;  %v47_v54 = vld [vmem:[#allocation2] sm:$0xff]  ;;  %v68_v55 = vld [vmem:[#allocation5 + $0x98] sm:$0xff] }
  0x2b   :  { %590 = vmatprep.subr.mxu1 %v105_v29  ;;  %556 = vmatpush3.msra.mxu0 %v57_v33  ;;  %v100_v56 = vld [vmem:[#allocation5 + $0x198] sm:$0xff]  ;;  %v179_v57 = vcombine.high %v47_v54, %v47_v54  ;;  %v67_v60 = vld [vmem:[#allocation5 + $0x90] sm:$0xff]  ;;  %v186_v62 = vrot.slane %v47_v54, %v791_v51  ;;  %v66_v2 = vld [vmem:[#allocation5 + $0x88] sm:$0xff] }
  0x2c   :  { %591 = vmatpush3.msra.mxu1 %v89_v34  ;;  %557 = vmatprep.subr.mxu0 %v72_v35  ;;  %v52_v58 = vld [vmem:[#allocation5 + $0x18] sm:$0xff]  ;;  %v99_v61 = vld [vmem:[#allocation5 + $0x190] sm:$0xff]  ;;  %v98_v3 = vld [vmem:[#allocation5 + $0x188] sm:$0xff] }
  0x2d   :  { %592 = vmatprep.subr.mxu1 %v104_v36  ;;  %558 = vmatpush3.msra.mxu0 %v56_v37  ;;  %v84_v59 = vld [vmem:[#allocation5 + $0x118] sm:$0xff]  ;;  %v51_v63 = vld [vmem:[#allocation5 + $0x10] sm:$0xff]  ;;  %v193_v1 = vrot.slane %v179_v57, %v791_v51  ;;  %v50_v4 = vld [vmem:[#allocation5 + $0x8] sm:$0xff]  ;;  %v194_v8 = vcombine.high %v186_v62, %v186_v62 }
  0x2e   :  { %593 = vmatpush3.msra.mxu1 %v88_v38  ;;  %559 = vmatprep.subr.mxu0 %v71_v39  ;;  %v83_v0 = vld [vmem:[#allocation5 + $0x110] sm:$0xff]  ;;  %v82_v5 = vld [vmem:[#allocation5 + $0x108] sm:$0xff]  ;;  %v65_v6 = vld [vmem:[#allocation5 + $0x80] sm:$0xff] }
  0x2f   :  { %594 = vmatprep.subr.mxu1 %v103_v40  ;;  %560 = vmatpush3.msra.mxu0 %v55_v43  ;;  %v97_v7 = vld [vmem:[#allocation5 + $0x180] sm:$0xff]  ;;  %v195_v10 = vcombine.high %v193_v1, %v193_v1  ;;  %v144_v12 = vld [vmem:[#allocation5 + $0x2f8] sm:$0xff]  ;;  %v143_v16 = vld [vmem:[#allocation5 + $0x2f0] sm:$0xff] }
  0x30   :  { %595 = vmatpush3.msra.mxu1 %v87_v44  ;;  %561 = vmatprep.subr.mxu0 %v70_v45  ;;  %v49_v9 = vld [vmem:[#allocation5] sm:$0xff]  ;;  %v176_v13 = vld [vmem:[#allocation5 + $0x3f8] sm:$0xff]  ;;  %v175_v17 = vld [vmem:[#allocation5 + $0x3f0] sm:$0xff] }
  0x31   :  { %596 = vmatprep.subr.mxu1 %v102_v46  ;;  %562 = vmatpush3.msra.mxu0 %v54_v47  ;;  %v81_v11 = vld [vmem:[#allocation5 + $0x100] sm:$0xff]  ;;  %v128_v14 = vld [vmem:[#allocation5 + $0x278] sm:$0xff]  ;;  %v127_v18 = vld [vmem:[#allocation5 + $0x270] sm:$0xff] }
  0x32   :  { %597 = vmatpush3.msra.mxu1 %v86_v48  ;;  %563 = vmatprep.subr.mxu0 %v69_v49  ;;  %v160_v15 = vld [vmem:[#allocation5 + $0x378] sm:$0xff]  ;;  %v159_v19 = vld [vmem:[#allocation5 + $0x370] sm:$0xff]  ;;  %v142_v20 = vld [vmem:[#allocation5 + $0x2e8] sm:$0xff] }
  0x33   :  { %598 = vmatprep.subr.mxu1 %v101_v50  ;;  %564 = vmatpush3.msra.mxu0 %v53_v52  ;;  %v174_v21 = vld [vmem:[#allocation5 + $0x3e8] sm:$0xff]  ;;  %v141_v24 = vld [vmem:[#allocation5 + $0x2e0] sm:$0xff]  ;;  %v140_v28 = vld [vmem:[#allocation5 + $0x2d8] sm:$0xff] }
  0x34   :  { %599 = vmatpush3.msra.mxu1 %v85_v53  ;;  %565 = vmatprep.subr.mxu0 %v68_v55  ;;  %v126_v22 = vld [vmem:[#allocation5 + $0x268] sm:$0xff]  ;;  %v173_v25 = vld [vmem:[#allocation5 + $0x3e0] sm:$0xff]  ;;  %v172_v29 = vld [vmem:[#allocation5 + $0x3d8] sm:$0xff] }
  0x35   :  { %600 = vmatprep.subr.mxu1 %v100_v56  ;;  %566 = vmatpush3.msra.mxu0 %v52_v58  ;;  %v158_v23 = vld [vmem:[#allocation5 + $0x368] sm:$0xff]  ;;  %v125_v26 = vld [vmem:[#allocation5 + $0x260] sm:$0xff]  ;;  %v124_v30 = vld [vmem:[#allocation5 + $0x258] sm:$0xff] }
  0x36   :  { %601 = vmatpush3.msra.mxu1 %v84_v59  ;;  %567 = vmatprep.subr.mxu0 %v67_v60  ;;  %v157_v27 = vld [vmem:[#allocation5 + $0x360] sm:$0xff]  ;;  %v156_v31 = vld [vmem:[#allocation5 + $0x358] sm:$0xff]  ;;  %v139_v32 = vld [vmem:[#allocation5 + $0x2d0] sm:$0xff] }
  0x37   :  { %602 = vmatprep.subr.mxu1 %v99_v61  ;;  %568 = vmatpush3.msra.mxu0 %v51_v63  ;;  %v171_v33 = vld [vmem:[#allocation5 + $0x3d0] sm:$0xff]  ;;  %v138_v36 = vld [vmem:[#allocation5 + $0x2c8] sm:$0xff]  ;;  %v137_v40 = vld [vmem:[#allocation5 + $0x2c0] sm:$0xff] }
  0x38   :  { %603 = vmatpush3.msra.mxu1 %v83_v0  ;;  %569 = vmatprep.subr.mxu0 %v66_v2  ;;  %v123_v34 = vld [vmem:[#allocation5 + $0x250] sm:$0xff]  ;;  %v170_v37 = vld [vmem:[#allocation5 + $0x3c8] sm:$0xff]  ;;  %v169_v41 = vld [vmem:[#allocation5 + $0x3c0] sm:$0xff] }
  0x39   :  { %604 = vmatprep.subr.mxu1 %v98_v3  ;;  %570 = vmatpush3.msra.mxu0 %v50_v4  ;;  %v155_v35 = vld [vmem:[#allocation5 + $0x350] sm:$0xff]  ;;  %v122_v38 = vld [vmem:[#allocation5 + $0x248] sm:$0xff]  ;;  %v121_v42 = vld [vmem:[#allocation5 + $0x240] sm:$0xff] }
  0x3a   :  { %605 = vmatpush3.msra.mxu1 %v82_v5  ;;  %571 = vmatprep.subr.mxu0 %v65_v6  ;;  %v154_v39 = vld [vmem:[#allocation5 + $0x348] sm:$0xff]  ;;  %v153_v43 = vld [vmem:[#allocation5 + $0x340] sm:$0xff]  ;;  %v136_v44 = vld [vmem:[#allocation5 + $0x2b8] sm:$0xff] }
  0x3b   :  { %606 = vmatprep.subr.mxu1 %v97_v7  ;;  %572 = vmatpush3.msra.mxu0 %v49_v9  ;;  %v168_v45 = vld [vmem:[#allocation5 + $0x3b8] sm:$0xff]  ;;  %v135_v48 = vld [vmem:[#allocation5 + $0x2b0] sm:$0xff]  ;;  %v134_v53 = vld [vmem:[#allocation5 + $0x2a8] sm:$0xff] }
  0x3c   :  { %285 = vmatprep.mubr.f32.mxu0 %v194_v8  ;;  %607 = vmatpush3.msra.mxu1 %v81_v11  ;;  %v120_v46 = vld [vmem:[#allocation5 + $0x238] sm:$0xff]  ;;  %v167_v49 = vld [vmem:[#allocation5 + $0x3b0] sm:$0xff]  ;;  %v166_v54 = vld [vmem:[#allocation5 + $0x3a8] sm:$0xff] }
  0x3d   :  { %355 = vmatprep.mubr.f32.mxu1 %v195_v10  ;;  %286 = vmatmul.mubr.f32.vlgmr.msra.gmra.mxu0 %v186_v62  ;;  %v152_v47 = vld [vmem:[#allocation5 + $0x338] sm:$0xff]  ;;  %v119_v50 = vld [vmem:[#allocation5 + $0x230] sm:$0xff]  ;;  %v118_v56 = vld [vmem:[#allocation5 + $0x228] sm:$0xff] }
  0x3e   :  { %356 = vmatmul.mubr.f32.vlgmr.msra.gmra.mxu1 %v193_v1  ;;  %611 = vmatprep.subr.mxu0 %v144_v12  ;;  %v151_v52 = vld [vmem:[#allocation5 + $0x330] sm:$0xff]  ;;  %v48_v55 = vld [vmem:[#allocation2 + $0x8] sm:$0xff]  ;;  %v150_v57 = vld [vmem:[#allocation5 + $0x328] sm:$0xff] }
  0x3f   :  { %646 = vmatprep.subr.mxu1 %v176_v13  ;;  %612 = vmatpush3.msra.mxu0 %v128_v14  ;;  %v133_v58 = vld [vmem:[#allocation5 + $0x2a0] sm:$0xff]  ;;  %v196_v62 = vcombine.high %v48_v55, %v48_v55  ;;  %v132_v63 = vld [vmem:[#allocation5 + $0x298] sm:$0xff]  ;;  %v131_v3 = vld [vmem:[#allocation5 + $0x290] sm:$0xff]  ;;  %v203_v5 = vrot.slane %v48_v55, %v791_v51 }
  0x40   :  { %647 = vmatpush3.msra.mxu1 %v160_v15  ;;  %613 = vmatprep.subr.mxu0 %v143_v16  ;;  %v165_v59 = vld [vmem:[#allocation5 + $0x3a0] sm:$0xff]  ;;  %v164_v0 = vld [vmem:[#allocation5 + $0x398] sm:$0xff]  ;;  %v163_v4 = vld [vmem:[#allocation5 + $0x390] sm:$0xff] }
  0x41   :  { %648 = vmatprep.subr.mxu1 %v175_v17  ;;  %614 = vmatpush3.msra.mxu0 %v127_v18  ;;  %v117_v60 = vld [vmem:[#allocation5 + $0x220] sm:$0xff]  ;;  %v116_v1 = vld [vmem:[#allocation5 + $0x218] sm:$0xff]  ;;  %v115_v6 = vld [vmem:[#allocation5 + $0x210] sm:$0xff]  ;;  %v210_v8 = vrot.slane %v196_v62, %v791_v51  ;;  %v211_v15 = vcombine.high %v203_v5, %v203_v5  ;;  %v763_v18 = vmov 0.0  }
  0x42   :  { %649 = vmatpush3.msra.mxu1 %v159_v19  ;;  %615 = vmatprep.subr.mxu0 %v142_v20  ;;  %v149_v61 = vld [vmem:[#allocation5 + $0x320] sm:$0xff]  ;;  %v148_v2 = vld [vmem:[#allocation5 + $0x318] sm:$0xff]  ;;  %v147_v7 = vld [vmem:[#allocation5 + $0x310] sm:$0xff]  ;;  %45 = vst [vmem:[#allocation7] sm:$0x3] %v763_v18 }
  0x43   :  { %650 = vmatprep.subr.mxu1 %v174_v21  ;;  %616 = vmatpush3.msra.mxu0 %v126_v22  ;;  %v130_v9 = vld [vmem:[#allocation5 + $0x288] sm:$0xff]  ;;  %v129_v13 = vld [vmem:[#allocation5 + $0x280] sm:$0xff]  ;;  %v212_v17 = vcombine.high %v210_v8, %v210_v8 }
  0x44   :  { %651 = vmatpush3.msra.mxu1 %v158_v23  ;;  %617 = vmatprep.subr.mxu0 %v141_v24  ;;  %v162_v10 = vld [vmem:[#allocation5 + $0x388] sm:$0xff]  ;;  %v161_v14 = vld [vmem:[#allocation5 + $0x380] sm:$0xff] }
  0x45   :  { %652 = vmatprep.subr.mxu1 %v173_v25  ;;  %618 = vmatpush3.msra.mxu0 %v125_v26  ;;  %v114_v11 = vld [vmem:[#allocation5 + $0x208] sm:$0xff]  ;;  %v113_v16 = vld [vmem:[#allocation5 + $0x200] sm:$0xff] }
  0x46   :  { %653 = vmatpush3.msra.mxu1 %v157_v27  ;;  %619 = vmatprep.subr.mxu0 %v140_v28  ;;  %v146_v12 = vld [vmem:[#allocation5 + $0x308] sm:$0xff]  ;;  %v145_v51 = vld [vmem:[#allocation5 + $0x300] sm:$0xff] }
  0x47   :  { %654 = vmatprep.subr.mxu1 %v172_v29  ;;  %620 = vmatpush3.msra.mxu0 %v124_v30 }
  0x48   :  { %655 = vmatpush3.msra.mxu1 %v156_v31  ;;  %621 = vmatprep.subr.mxu0 %v139_v32 }
  0x49   :  { %656 = vmatprep.subr.mxu1 %v171_v33  ;;  %622 = vmatpush3.msra.mxu0 %v123_v34  ;;  %v46_v33 = vld [vmem:[#allocation7] sm:$0x3] }
  0x4a   :  { %657 = vmatpush3.msra.mxu1 %v155_v35  ;;  %623 = vmatprep.subr.mxu0 %v138_v36  ;;  %v540_v36 = vld [vmem:[%s805_s2] ss:$0 sm:$0xff] }
  0x4b   :  { %658 = vmatprep.subr.mxu1 %v170_v37  ;;  %624 = vmatpush3.msra.mxu0 %v122_v38 }
  0x4c   :  { %659 = vmatpush3.msra.mxu1 %v154_v39  ;;  %625 = vmatprep.subr.mxu0 %v137_v40 }
  0x4d   :  { %660 = vmatprep.subr.mxu1 %v169_v41  ;;  %626 = vmatpush3.msra.mxu0 %v121_v42 }
  0x4e   :  { %661 = vmatpush3.msra.mxu1 %v153_v43  ;;  %627 = vmatprep.subr.mxu0 %v136_v44 }
  0x4f   :  { %662 = vmatprep.subr.mxu1 %v168_v45  ;;  %628 = vmatpush3.msra.mxu0 %v120_v46 }
  0x50   :  { %663 = vmatpush3.msra.mxu1 %v152_v47  ;;  %629 = vmatprep.subr.mxu0 %v135_v48 }
  0x51   :  { %664 = vmatprep.subr.mxu1 %v167_v49  ;;  %630 = vmatpush3.msra.mxu0 %v119_v50 }
  0x52   :  { %665 = vmatpush3.msra.mxu1 %v151_v52  ;;  %631 = vmatprep.subr.mxu0 %v134_v53 }
  0x53   :  { %666 = vmatprep.subr.mxu1 %v166_v54  ;;  %632 = vmatpush3.msra.mxu0 %v118_v56 }
  0x54   :  { %667 = vmatpush3.msra.mxu1 %v150_v57  ;;  %633 = vmatprep.subr.mxu0 %v133_v58 }
  0x55   :  { %668 = vmatprep.subr.mxu1 %v165_v59  ;;  %634 = vmatpush3.msra.mxu0 %v117_v60 }
  0x56   :  { %669 = vmatpush3.msra.mxu1 %v149_v61  ;;  %635 = vmatprep.subr.mxu0 %v132_v63 }
  0x57   :  { %670 = vmatprep.subr.mxu1 %v164_v0  ;;  %636 = vmatpush3.msra.mxu0 %v116_v1 }
  0x58   :  { %671 = vmatpush3.msra.mxu1 %v148_v2  ;;  %637 = vmatprep.subr.mxu0 %v131_v3 }
  0x59   :  { %672 = vmatprep.subr.mxu1 %v163_v4  ;;  %638 = vmatpush3.msra.mxu0 %v115_v6 }
  0x5a   :  { %673 = vmatpush3.msra.mxu1 %v147_v7  ;;  %639 = vmatprep.subr.mxu0 %v130_v9 }
  0x5b   :  { %674 = vmatprep.subr.mxu1 %v162_v10  ;;  %640 = vmatpush3.msra.mxu0 %v114_v11 }
  0x5c   :  { %675 = vmatpush3.msra.mxu1 %v146_v12  ;;  %641 = vmatprep.subr.mxu0 %v129_v13 }
  0x5d   :  { %676 = vmatprep.subr.mxu1 %v161_v14  ;;  %642 = vmatpush3.msra.mxu0 %v113_v16 }
  0x5e   :  { %425 = vmatprep.mubr.f32.mxu0 %v211_v15  ;;  %677 = vmatpush3.msra.mxu1 %v145_v51 }
  0x5f   :  { %495 = vmatprep.mubr.f32.mxu1 %v212_v17  ;;  %426 = vmatmul.mubr.f32.vlgmr.msra.gmra.mxu0 %v203_v5 }
  0x60   :  { %496 = vmatmul.mubr.f32.vlgmr.msra.gmra.mxu1 %v210_v8 }
  0xfd   :  { %v573_v19 = vpop.f32.mrf.mxu0 }
  0xfe   :  { %v608_v20 = vpop.f32.mrf.mxu1 }
  0xff   :  { %v574_v21 = vpop.f32.mrf.mxu0 }
 0x100   :  { %v609_v22 = vpop.f32.mrf.mxu1  ;;  %v575_v23 = vadd.f32 %v574_v21, %v573_v19 }
 0x101   :  { %v610_v24 = vadd.f32 %v609_v22, %v608_v20 }
 0x103   :  { %v358_v29 = vadd.f32 %v610_v24, %v575_v23 }
 0x11f   :  { %v643_v25 = vpop.f32.mrf.mxu0 }
 0x120   :  { %v678_v26 = vpop.f32.mrf.mxu1 }
 0x121   :  { %v644_v27 = vpop.f32.mrf.mxu0 }
 0x122   :  { %v679_v28 = vpop.f32.mrf.mxu1  ;;  %v645_v30 = vadd.f32 %v644_v27, %v643_v25 }
 0x123   :  { %v680_v32 = vadd.f32 %v679_v28, %v678_v26 }
 0x124   :  { %v428_v31 = vadd.f32 %v645_v30, %v358_v29 }
 0x126   :  { %v498_v34 = vadd.f32 %v680_v32, %v428_v31 }
 0x128   :  { %v501_v35 = vadd.f32 %v498_v34, %v46_v33 }
 0x12a   :  { %502 = vst [vmem:[#allocation7] sm:$0x3] %v501_v35 }
 0x131   :  { %v506_v37 = vld [vmem:[#allocation7] sm:$0x3] }
 0x132   :  { %v514_v38 = vadd.f32 %v540_v36, %v506_v37 }
 0x134   :  { %v515_v39 = vmul.f32 %v514_v38, %v514_v38 }
 0x136   :  { %v517_v40 = vsel %vm516_vm0, %v515_v39, 0.0 }
 0x137   :  { %518 = vadd.xlane.f32.xlu0 %v517_v40 }
 0x1c0   :  { %v519_v41 = vpop.xlane.xlu0 %518 }
 0x1c1   :  { %v520_v42 = vadd.f32 1e-12, %v519_v41 }
 0x1c3   :  { %690 = vrsqrt.f32 %v520_v42 }
 0x1d0   :  { %v691_v43 = vpop.eup %690 }
 0x1d1   :  { %v522_v44 = vmul.f32 %v691_v43, %v514_v38 }
 0x1d3   :  { %523 = vst [vmem:[#allocation7] sm:$0x3] %v522_v44 }
 0x1d4   :  { %743 = shalt.err (!%p740_p0)
}
 0x1d5   :  { %533 = dma.vmem_to_hbm [thread:$0]  %s531_s25, 32, %s806_s3, [#allocation4]  }
 0x1d6   :  { %756 = dma.done.wait [#allocation4], 32  }
 0x1d7   :  { %757 = vsyncadd [#allocation4], 4294967264 }
 0x1d8   :  { %537 = vsyncpa [#allocation3], 1 }
 0x1d9   :  { %538 = vsyncpa [#allocation6], 1 }
 0x1da   :  { %539 = vsyncpa [#allocation4], 1 }

</bundles_post_ra>
